<compile_context>
chip_gen: v5e
topology: v5e:2x2
jax: 0.10.0
libtpu: 0.0.40
codegen_flags: <defaults>
</compile_context>

<pallas_src>
import jax
import jax.numpy as jnp
from jax.experimental import pallas as pl
from jax.experimental.pallas import tpu as pltpu


def _imul_kernel(x_ref, y_ref, o_ref):
    # One lane-dense (r_blk, cols) tile per grid step: o = x * y.
    o_ref[...] = (x_ref[...] * y_ref[...]).astype(o_ref.dtype)


def _imul_scalar_kernel(x_ref, y_ref, o_ref):
    # y_ref is a (1, 1) scalar living in SMEM; broadcast-multiply in VPU.
    y = y_ref[0, 0].astype(x_ref.dtype)
    o_ref[...] = (x_ref[...] * y).astype(o_ref.dtype)


def _sublane_multiple(dtype) -> int:
    # Min tile second-minor: 8 for 32-bit, 16 for 16-bit, 32 for 8-bit dtypes.
    return max(8, 32 // jnp.dtype(dtype).itemsize)


def _pick_cols(total: int) -> int:
    # Largest lane-dense width (multiple of 128) dividing `total` exactly.
    for c in (1024, 512, 256, 128):
        if total % c == 0:
            return c
    return 0  # ragged


def _imul_pallas_2d(x2d, y_op, *, scalar_y, tile_bytes, vmem_limit_bytes):
    rows, cols = x2d.shape
    dtype = x2d.dtype
    itemsize = jnp.dtype(dtype).itemsize
    sub = _sublane_multiple(dtype)

    # ~tile_bytes per tile, rounded down to the dtype's sublane multiple.
    r_blk = max(sub, (tile_bytes // (cols * itemsize)) // sub * sub)
    if r_blk >= rows:
        r_blk = rows  # full-extent block: exempt from the (sub, 128) rule
    grid = (pl.cdiv(rows, r_blk),)

    x_spec = pl.BlockSpec((r_blk, cols), lambda i: (i, 0))
    if scalar_y:
        kernel = _imul_scalar_kernel
        in_specs = [x_spec, pl.BlockSpec(memory_space=pltpu.MemorySpace.SMEM)]
        bytes_accessed = 2 * rows * cols * itemsize  # read x + write out
    else:
        kernel = _imul_kernel
        in_specs = [x_spec, pl.BlockSpec((r_blk, cols), lambda i: (i, 0))]
        bytes_accessed = 3 * rows * cols * itemsize  # read x, read y, write out

    return pl.pallas_call(
        kernel,
        out_shape=jax.ShapeDtypeStruct((rows, cols), dtype),
        grid=grid,
        in_specs=in_specs,
        out_specs=pl.BlockSpec((r_blk, cols), lambda i: (i, 0)),
        # In-place IMul semantics: reuse x's (reshaped, un-padded) buffer.
        input_output_aliases={0: 0},
        cost_estimate=pl.CostEstimate(
            flops=rows * cols, transcendentals=0, bytes_accessed=bytes_accessed),
        compiler_params=pltpu.CompilerParams(
            dimension_semantics=("parallel",),
            vmem_limit_bytes=vmem_limit_bytes,
        ),
    )(x2d, y_op)


def imul(x, y, *,
         tile_bytes: int = 4 << 20,
         vmem_limit_bytes: int = 40 << 20,
         min_pallas_bytes: int = 1 << 20):
    """PyTorch `x *= y` semantics: result keeps x's shape/dtype; y broadcasts."""
    x = jnp.asarray(x)
    y = jnp.asarray(y)
    out_shape = x.shape
    scalar_y = (y.size == 1)

    if scalar_y:
        y = y.reshape(())
    elif y.shape != x.shape:
        # Rare arbitrary broadcast: materialize once (scalar / same-shape y,
        # the common cases, never take this branch).
        y = jnp.broadcast_to(y, x.shape).astype(x.dtype)
    else:
        y = y.astype(x.dtype)

    total = x.size
    nbytes = total * jnp.dtype(x.dtype).itemsize
    if total == 0 or nbytes < min_pallas_bytes:
        # Tiny problem: pallas_call fixed cost dominates; let XLA fuse it.
        return (x * y).astype(x.dtype)

    xf = x.reshape(-1)
    if scalar_y:
        smem_dtype = (jnp.float32 if jnp.issubdtype(x.dtype, jnp.floating)
                      else jnp.int32)
        y_op = y.astype(smem_dtype).reshape(1, 1)

    cols = _pick_cols(total)
    if cols:
        # Aligned fast path: pure reshape, no padding, no tail slice.
        x2d = xf.reshape(total // cols, cols)
        if scalar_y:
            out2d = _imul_pallas_2d(x2d, y_op, scalar_y=True,
                                    tile_bytes=tile_bytes,
                                    vmem_limit_bytes=vmem_limit_bytes)
        else:
            y2d = y.reshape(total // cols, cols)
            out2d = _imul_pallas_2d(x2d, y2d, scalar_y=False,
                                    tile_bytes=tile_bytes,
                                    vmem_limit_bytes=vmem_limit_bytes)
        return out2d.reshape(out_shape)

    # Ragged size: Pallas on the 128-aligned prefix, XLA on the tiny tail.
    aligned = (total // 128) * 128
    if aligned == 0:
        return (x * y).astype(x.dtype)
    cols_p = _pick_cols(aligned)
    x_head = xf[:aligned].reshape(aligned // cols_p, cols_p)
    if scalar_y:
        head = _imul_pallas_2d(x_head, y_op, scalar_y=True,
                               tile_bytes=tile_bytes,
                               vmem_limit_bytes=vmem_limit_bytes)
        tail = (xf[aligned:] * y).astype(x.dtype)
    else:
        yf = y.reshape(-1)
        head = _imul_pallas_2d(x_head,
                               yf[:aligned].reshape(aligned // cols_p, cols_p),
                               scalar_y=False, tile_bytes=tile_bytes,
                               vmem_limit_bytes=vmem_limit_bytes)
        tail = (xf[aligned:] * yf[aligned:]).astype(x.dtype)
    return jnp.concatenate([head.reshape(-1), tail]).reshape(out_shape)


if __name__ == "__main__":
    key = jax.random.PRNGKey(0)
    kx, ky = jax.random.split(key)
    shape = (2, 4, 16, 16)
    x = jax.random.normal(kx, shape, dtype=jnp.float32)
    y = jax.random.normal(ky, shape, dtype=jnp.float32)

    # Reference computed up front (the kernel may alias/donate x's buffer).
    ref = x * y

    # Force the Pallas path even at this tiny test size.
    out = imul(x, y, min_pallas_bytes=0)
    out = jax.block_until_ready(out)
    assert out.shape == x.shape and out.dtype == x.dtype
    assert jnp.allclose(out, ref, atol=1e-6, rtol=1e-6)

    # Scalar-y (broadcast) path: y stays un-broadcast, multiplied via SMEM.
    ys = jnp.float32(1.5)
    out_s = jax.block_until_ready(imul(x, ys, min_pallas_bytes=0))
    assert out_s.shape == x.shape and out_s.dtype == x.dtype
    assert jnp.allclose(out_s, x * ys, atol=1e-6, rtol=1e-6)

    print("KERNEL_OK")
</pallas_src>

<mosaic_0001>
module attributes {stable_mosaic.version = 11 : i64} {
  func.func @_imul_kernel(%arg0: i32, %arg1: memref<2x1024xf32, #tpu.memory_space<vmem>>, %arg2: memref<2x1024xf32, #tpu.memory_space<vmem>>, %arg3: memref<2x1024xf32, #tpu.memory_space<vmem>>) attributes {dimension_semantics = [#tpu.dimension_semantics<parallel>], iteration_bounds = array<i64: 1>, scalar_prefetch = 0 : i64, scratch_operands = 0 : i64, tpu.core_type = #tpu.core_type<tc>, window_params = [{transform_indices = @transform_0, window_bounds = array<i64: 2, 1024>}, {transform_indices = @transform_1, window_bounds = array<i64: 2, 1024>}, {transform_indices = @transform_2, window_bounds = array<i64: 2, 1024>}]} {
    %c0 = arith.constant 0 : index
    %c0_0 = arith.constant 0 : index
    %0 = vector.load %arg1[%c0, %c0_0] : memref<2x1024xf32, #tpu.memory_space<vmem>>, vector<2x1024xf32>
    %c0_1 = arith.constant 0 : index
    %c0_2 = arith.constant 0 : index
    %1 = vector.load %arg2[%c0_1, %c0_2] : memref<2x1024xf32, #tpu.memory_space<vmem>>, vector<2x1024xf32>
    %2 = arith.mulf %0, %1 : vector<2x1024xf32>
    %c0_3 = arith.constant 0 : index
    %c0_4 = arith.constant 0 : index
    %3 = vector.load %arg3[%c0_3, %c0_4] : memref<2x1024xf32, #tpu.memory_space<vmem>>, vector<2x1024xf32>
    tpu.vector_store %arg3[%c0_3, %c0_4], %2 {strides = array<i32>} : memref<2x1024xf32, #tpu.memory_space<vmem>>, vector<2x1024xf32>,
    return
  }
  func.func @transform_0(%arg0: i32) -> (i32, i32) {
    %c0_i32 = arith.constant 0 : i32
    %c0_i32_0 = arith.constant 0 : i32
    return %arg0, %c0_i32 : i32, i32
  }
  func.func @transform_1(%arg0: i32) -> (i32, i32) {
    %c0_i32 = arith.constant 0 : i32
    %c0_i32_0 = arith.constant 0 : i32
    return %arg0, %c0_i32 : i32, i32
  }
  func.func @transform_2(%arg0: i32) -> (i32, i32) {
    %c0_i32 = arith.constant 0 : i32
    %c0_i32_0 = arith.constant 0 : i32
    return %arg0, %c0_i32 : i32, i32
  }
}

</mosaic_0001>

<bundles_post_ra>
// kernel: tpu_custom_call.1
= control target key start
LH: loop header
LB: loop body
LE: loop exit
PB: predicated region body
PF: predicated region fallthrough
CT: control target
= control target key end

     0   :  { %7 = vsyncpa [#allocation3], 0  ;;  %s134_s0 = inlined_call_operand.hbm [shape: f32[2,1024], index: 0, kind: input, shape index: {}, may-alias: {0,2}]   ;;  %s135_s1 = inlined_call_operand.vmem [shape: f32[2,1024], index: 1, kind: input, shape index: {}]   ;;  %s136_s2 = inlined_call_operand.hbm [shape: f32[2,1024], index: 2, kind: output, shape index: {}, may-alias: {0,2}]  }
   0x1   :  { %8 = vsyncpa [#allocation4], 0  ;;  %s14_s11 = sshll.u32 %s134_s0, 4  ;;  %s105_s12 = smov [#allocation2]   ;;  %s15_s11 = int_to_ptr.hbm [resolvable:$true] %s14_s11 }
   0x2   :  { %s16_s13 = sshll.u32 %s105_s12, 4  ;;  %s17_s13 = int_to_ptr.vmem [resolvable:$true] %s16_s13 }
   0x3   :  { %19 = dma.hbm_to_vmem [thread:$0]  %s15_s11, 256, %s17_s13, [#allocation3]  }
   0x4   :  { %101 = dma.done.wait [#allocation3], 256  }
   0x5   :  { %102 = vsyncadd [#allocation3], 4294967040  ;;  %s106_s14 = smov [#allocation5]   ;;  %s41_s18 = sshll.u32 %s136_s2, 4  ;;  %v26_v0 = vld [vmem:[#allocation2] sm:$0xff]  ;;  %v27_v2 = vld [vmem:[#allocation2 + $0x8] sm:$0xff]  ;;  %s42_s18 = int_to_ptr.hbm [resolvable:$true] %s41_s18 }
   0x6   :  { %s39_s15 = sshll.u32 %s106_s14, 4  ;;  %v28_v1 = vld [vmem:[%s135_s1] sm:$0xff]  ;;  %v29_v4 = vld [vmem:[%s135_s1 + $0x8] sm:$0xff]  ;;  %s40_s15 = int_to_ptr.vmem [resolvable:$true] %s39_s15 }
   0x7   :  { %v30_v3 = vmul.f32 %v28_v1, %v26_v0  ;;  %v31_v5 = vmul.f32 %v29_v4, %v27_v2 }
   0x9   :  { %32 = vst [vmem:[#allocation5] sm:$0xff] %v30_v3 }
   0xa   :  { %33 = vst [vmem:[#allocation5 + $0x8] sm:$0xff] %v31_v5 }
   0xb   :  { %44 = dma.vmem_to_hbm [thread:$0]  %s40_s15, 256, %s42_s18, [#allocation4]  }
   0xc   :  { %103 = dma.done.wait [#allocation4], 256  }
   0xd   :  { %104 = vsyncadd [#allocation4], 4294967040 }
   0xe   :  { %49 = vsyncpa [#allocation3], 1 }
   0xf   :  { %50 = vsyncpa [#allocation4], 1 }

</bundles_post_ra>
